<compile_context>
chip_gen: v7x
topology: tpu7x:2x2x1
jax: 0.10.0
libtpu: 0.0.40
codegen_flags: <defaults>
</compile_context>

<pallas_src>
import math

import jax
import jax.numpy as jnp
import numpy as np
from jax.experimental import pallas as pl
from jax.experimental.pallas import tpu as pltpu

NSP = 9          # 3x3 superpixel neighborhood
EPS = 1e-15


# ---------------------------------------------------------------------------
# Pallas kernel: exp / reweight / key-softmax normalization on (K, TP) tiles.
# Keys live on sublanes (9 -> pads to 16), pixels live on lanes (TP, multiple of 128).
# ---------------------------------------------------------------------------
def _attn_reweight_kernel(attn_ref, w_ref, out_ref):
    a = attn_ref[0, 0]                                 # (K, TP)
    c = jnp.max(a, axis=0, keepdims=True)              # (1, TP)  max over keys
    e = jnp.exp(a - c)                                 # (K, TP)
    acc = e * w_ref[0]                                 # (K, TP)  pre-mixed sum_n pi*pj
    denom = jnp.sum(acc, axis=0, keepdims=True) + EPS  # (1, TP)
    out_ref[0, 0] = (acc * pl.reciprocal(denom, approx=False)).astype(out_ref.dtype)


# ---------------------------------------------------------------------------
# JAX glue: index / gather plumbing (matches torch get_indices + GatherSims)
# ---------------------------------------------------------------------------
def _get_indices(H, W, sH, sW):
    # nearest-neighbor downsample assignment (torch interpolate mode='nearest')
    sr = jnp.minimum((jnp.arange(H) * sH) // H, sH - 1)
    sc = jnp.minimum((jnp.arange(W) * sW) // W, sW - 1)
    sr = jnp.broadcast_to(sr[:, None], (H, W)).astype(jnp.int32)
    sc = jnp.broadcast_to(sc[None, :], (H, W)).astype(jnp.int32)
    return sr, sc


def _key_window(H, W, K):
    ksize = int(round(math.sqrt(K)))
    assert ksize * ksize == K, "K must be a square (k*k key window)"
    r = ksize // 2
    koffs = jnp.array([(dh, dw) for dh in range(-r, r + 1)
                       for dw in range(-r, r + 1)], dtype=jnp.int32)            # (K, 2)
    key_h = jnp.clip(jnp.arange(H)[:, None] + koffs[:, 0][None, :], 0, H - 1)   # (H, K)
    key_w = jnp.clip(jnp.arange(W)[:, None] + koffs[:, 1][None, :], 0, W - 1)   # (W, K)
    return key_h, key_w


def _compute_weight(sims, K):
    """w[b,h,w,k] = sum_n P(L_i = s_n) * P(L_{j(h,w,k)} = s_n), accumulated per
    neighbor so the (B, 9, H, W, K) pj tensor is never materialized."""
    B, H, W, sH, sW = sims.shape
    sr, sc = _get_indices(H, W, sH, sW)
    key_h, key_w = _key_window(H, W, K)

    b_idx = jnp.arange(B)[:, None, None, None]      # (B,1,1,1)
    kh = key_h[None, :, None, :]                    # (1,H,1,K)
    kw = key_w[None, None, :, :]                    # (1,1,W,K)
    h_idx = jnp.arange(H)[:, None]
    w_idx = jnp.arange(W)[None, :]

    w_acc = jnp.zeros((B, H, W, K), sims.dtype)
    for dr in (-1, 0, 1):                           # static, 9 neighbors row-major
        for dc in (-1, 0, 1):
            nr = sr + dr
            nc = sc + dc
            valid = ((nr >= 0) & (nr < sH) &
                     (nc >= 0) & (nc < sW)).astype(sims.dtype)      # (H, W)
            nr = jnp.clip(nr, 0, sH - 1)
            nc = jnp.clip(nc, 0, sW - 1)
            # pi_n[b,h,w] = P(L_i = s_n), zeroed for off-grid superpixels
            pi_n = sims[:, h_idx, w_idx, nr, nc] * valid[None]       # (B, H, W)
            # pj_n[b,h,w,k] = P(L_{j(h,w,k)} = s_n)
            pj_n = sims[b_idx, kh, kw,
                        nr[None, :, :, None], nc[None, :, :, None]]  # (B, H, W, K)
            w_acc = w_acc + pi_n[..., None] * pj_n
    return w_acc


def _pick_tile(P, cap=2048):
    """Largest pixel tile: full P if it fits the cap (or isn't 128-aligned),
    else the largest multiple of 128 dividing P that is <= cap."""
    if P % 128 != 0 or P <= cap:
        return P
    for m in range(cap // 128, 0, -1):
        tp = 128 * m
        if P % tp == 0:
            return tp
    return P


# ---------------------------------------------------------------------------
# Wrapper
# ---------------------------------------------------------------------------
@jax.jit
def attn_reweight(attn, sims):
    """attn: (B, HD, H, W, K) f32 logits; sims: (B, H, W, sH, sW) probabilities."""
    B, HD, H, W, K = attn.shape
    P = H * W

    # Head-invariant reweighting mix, computed once in the wrapper.
    w = _compute_weight(sims.astype(attn.dtype), K)                  # (B, H, W, K)

    # Lane-dense, pixel-minor layouts for the kernel.
    attn_t = attn.reshape(B, HD, P, K).transpose(0, 1, 3, 2)         # (B, HD, K, P)
    w_t = w.reshape(B, P, K).transpose(0, 2, 1)                      # (B, K, P)

    TP = _pick_tile(P)
    grid = (B, P // TP, HD)   # head innermost -> w block reused across heads (no re-DMA)

    itemsize = jnp.dtype(attn.dtype).itemsize
    cost = pl.CostEstimate(
        flops=5 * B * HD * P * K,
        transcendentals=B * HD * P * K,
        bytes_accessed=(2 * B * HD * P * K + B * P * K) * itemsize,
    )

    out_t = pl.pallas_call(
        _attn_reweight_kernel,
        out_shape=jax.ShapeDtypeStruct((B, HD, K, P), attn.dtype),
        grid_spec=pltpu.PrefetchScalarGridSpec(
            num_scalar_prefetch=0,
            grid=grid,
            in_specs=[
                pl.BlockSpec((1, 1, K, TP), lambda b, t, h: (b, h, 0, t)),
                pl.BlockSpec((1, K, TP), lambda b, t, h: (b, 0, t)),
            ],
            out_specs=pl.BlockSpec((1, 1, K, TP), lambda b, t, h: (b, h, 0, t)),
        ),
        compiler_params=pltpu.CompilerParams(
            dimension_semantics=("parallel", "parallel", "arbitrary")),
        cost_estimate=cost,
    )(attn_t, w_t)

    return out_t.transpose(0, 1, 3, 2).reshape(B, HD, H, W, K)


# ---------------------------------------------------------------------------
# Pure-JAX reference (independent pi/pj gather + einsum) for correctness check
# ---------------------------------------------------------------------------
def _gather_probs_ref(sims, K):
    B, H, W, sH, sW = sims.shape
    sr, sc = _get_indices(H, W, sH, sW)

    offs = jnp.array([(dr, dc) for dr in (-1, 0, 1) for dc in (-1, 0, 1)],
                     dtype=jnp.int32)                            # (NSP, 2)
    nbr_r = sr[:, :, None] + offs[:, 0][None, None, :]           # (H, W, NSP)
    nbr_c = sc[:, :, None] + offs[:, 1][None, None, :]
    valid = ((nbr_r >= 0) & (nbr_r < sH) &
             (nbr_c >= 0) & (nbr_c < sW)).astype(sims.dtype)
    nbr_r = jnp.clip(nbr_r, 0, sH - 1)
    nbr_c = jnp.clip(nbr_c, 0, sW - 1)

    h_idx = jnp.arange(H)[:, None, None]
    w_idx = jnp.arange(W)[None, :, None]
    pi = sims[:, h_idx, w_idx, nbr_r, nbr_c] * valid[None]       # (B, H, W, NSP)

    key_h, key_w = _key_window(H, W, K)
    b_idx = jnp.arange(B)[:, None, None, None, None]
    kh = key_h[None, None, :, None, :]
    kw = key_w[None, None, None, :, :]
    srn = jnp.transpose(nbr_r, (2, 0, 1))[None, :, :, :, None]
    scn = jnp.transpose(nbr_c, (2, 0, 1))[None, :, :, :, None]
    vld = jnp.transpose(valid, (2, 0, 1))[None, :, :, :, None]
    pj = sims[b_idx, kh, kw, srn, scn] * vld                     # (B, NSP, H, W, K)
    return pi, pj


def _reference(attn, sims):
    B, HD, H, W, K = attn.shape
    pi, pj = _gather_probs_ref(sims.astype(attn.dtype), K)
    c = jnp.max(attn, -1, keepdims=True)
    e = jnp.exp(attn - c)                                        # (B,HD,H,W,K)
    w = jnp.einsum('bhwn,bnhwk->bhwk', pi, pj)                   # (B,H,W,K)
    acc = e * w[:, None]
    return acc / (EPS + jnp.sum(acc, -1, keepdims=True))


if __name__ == "__main__":
    key = jax.random.PRNGKey(0)
    B, HD, H, W = 2, 2, 16, 16
    sH, sW = 4, 4
    K = 9                                   # 3x3 key window

    k1, k2 = jax.random.split(key)
    attn = jax.random.normal(k1, (B, HD, H, W, K), dtype=jnp.float32)
    sims = jax.nn.softmax(
        jax.random.normal(k2, (B, H, W, sH * sW), dtype=jnp.float32), axis=-1
    ).reshape(B, H, W, sH, sW)

    out = attn_reweight(attn, sims)
    out = jax.block_until_ready(out)

    ref = _reference(attn, sims)
    np.testing.assert_allclose(np.asarray(out), np.asarray(ref), rtol=1e-5, atol=1e-6)
    print("KERNEL_OK")
</pallas_src>

<mosaic_0001>
module attributes {stable_mosaic.version = 11 : i64} {
  func.func private @main(%arg0: i32) attributes {dimension_semantics = [#tpu.dimension_semantics<core_parallel>], iteration_bounds = array<i64: 2>, tpu.core_type = #tpu.core_type<sc_scalar_subcore>, window_params = []} {
    return
  }
}

module attributes {stable_mosaic.version = 11 : i64} {
  func.func private @main(%arg0: i32) attributes {dimension_semantics = [#tpu.dimension_semantics<core_parallel>], iteration_bounds = array<i64: 2>, tpu.core_type = #tpu.core_type<sc_scalar_subcore>, window_params = []} {
    return
  }
}

module attributes {stable_mosaic.version = 11 : i64} {
  func.func @_attn_reweight_kernel(%arg0: i32, %arg1: i32, %arg2: i32, %arg3: memref<1x1x9x256xf32, #tpu.memory_space<vmem>>, %arg4: memref<1x9x256xf32, #tpu.memory_space<vmem>>, %arg5: memref<1x1x9x256xf32, #tpu.memory_space<vmem>>) attributes {dimension_semantics = [#tpu.dimension_semantics<parallel>, #tpu.dimension_semantics<parallel>, #tpu.dimension_semantics<arbitrary>], iteration_bounds = array<i64: 2, 1, 2>, scalar_prefetch = 0 : i64, scratch_operands = 0 : i64, tpu.core_type = #tpu.core_type<tc>, window_params = [{transform_indices = @transform_0, window_bounds = array<i64: 1, 1, 9, 256>}, {transform_indices = @transform_1, window_bounds = array<i64: 1, 9, 256>}, {transform_indices = @transform_2, window_bounds = array<i64: 1, 1, 9, 256>}]} {
    %c0 = arith.constant 0 : index
    %c0_0 = arith.constant 0 : index
    %c0_1 = arith.constant 0 : index
    %c0_2 = arith.constant 0 : index
    %0 = vector.load %arg3[%c0, %c0_0, %c0_1, %c0_2] : memref<1x1x9x256xf32, #tpu.memory_space<vmem>>, vector<1x1x9x256xf32>
    %1 = vector.shape_cast %0 : vector<1x1x9x256xf32> to vector<9x256xf32>
    %cst = arith.constant dense<0xFF800000> : vector<256xf32>
    %2 = vector.multi_reduction <maximumf>, %1, %cst [0] : vector<9x256xf32> to vector<256xf32>
    %3 = vector.shape_cast %2 : vector<256xf32> to vector<1x256xf32>
    %4 = vector.broadcast %3 : vector<1x256xf32> to vector<9x256xf32>
    %5 = arith.subf %1, %4 : vector<9x256xf32>
    %6 = math.exp %5 : vector<9x256xf32>
    %c0_3 = arith.constant 0 : index
    %c0_4 = arith.constant 0 : index
    %c0_5 = arith.constant 0 : index
    %7 = vector.load %arg4[%c0_3, %c0_4, %c0_5] : memref<1x9x256xf32, #tpu.memory_space<vmem>>, vector<1x9x256xf32>
    %8 = vector.shape_cast %7 : vector<1x9x256xf32> to vector<9x256xf32>
    %9 = arith.mulf %6, %8 : vector<9x256xf32>
    %cst_6 = arith.constant dense<0.000000e+00> : vector<256xf32>
    %10 = vector.multi_reduction <add>, %9, %cst_6 [0] : vector<9x256xf32> to vector<256xf32>
    %11 = vector.shape_cast %10 : vector<256xf32> to vector<1x256xf32>
    %cst_7 = arith.constant 1.000000e-15 : f32
    %12 = vector.broadcast %cst_7 : f32 to vector<1x256xf32>
    %13 = arith.addf %11, %12 : vector<1x256xf32>
    %14 = tpu.reciprocal %13 : vector<1x256xf32> -> vector<1x256xf32>
    %15 = vector.broadcast %14 : vector<1x256xf32> to vector<9x256xf32>
    %16 = arith.mulf %9, %15 : vector<9x256xf32>
    %c0_8 = arith.constant 0 : index
    %c0_9 = arith.constant 0 : index
    %c0_10 = arith.constant 0 : index
    %c0_11 = arith.constant 0 : index
    %17 = vector.load %arg5[%c0_8, %c0_9, %c0_10, %c0_11] : memref<1x1x9x256xf32, #tpu.memory_space<vmem>>, vector<1x1x9x256xf32>
    %18 = vector.shape_cast %17 : vector<1x1x9x256xf32> to vector<9x256xf32>
    %19 = vector.shape_cast %16 : vector<9x256xf32> to vector<1x1x9x256xf32>
    tpu.vector_store %arg5[%c0_8, %c0_9, %c0_10, %c0_11], %19 {strides = array<i32>} : memref<1x1x9x256xf32, #tpu.memory_space<vmem>>, vector<1x1x9x256xf32>,
    return
  }
  func.func @transform_0(%arg0: i32, %arg1: i32, %arg2: i32) -> (i32, i32, i32, i32) {
    %c0_i32 = arith.constant 0 : i32
    %c0_i32_0 = arith.constant 0 : i32
    return %arg0, %arg2, %c0_i32, %arg1 : i32, i32, i32, i32
  }
  func.func @transform_1(%arg0: i32, %arg1: i32, %arg2: i32) -> (i32, i32, i32) {
    %c0_i32 = arith.constant 0 : i32
    %c0_i32_0 = arith.constant 0 : i32
    return %arg0, %c0_i32, %arg1 : i32, i32, i32
  }
  func.func @transform_2(%arg0: i32, %arg1: i32, %arg2: i32) -> (i32, i32, i32, i32) {
    %c0_i32 = arith.constant 0 : i32
    %c0_i32_0 = arith.constant 0 : i32
    return %arg0, %arg2, %c0_i32, %arg1 : i32, i32, i32, i32
  }
}

</mosaic_0001>

<bundles_post_ra>
// kernel: attn_reweight.1
= control target key start
LH: loop header
LB: loop body
LE: loop exit
PB: predicated region body
PF: predicated region fallthrough
CT: control target
= control target key end

     0   :  { %s575_s9 = smov 0   ;;  %s577_s10 = smov 0   ;;  %s644_s0 = inlined_call_operand.vmem [shape: f32[2,2,9,256], index: 0, kind: input, shape index: {}]   ;;  %s645_s1 = inlined_call_operand.vmem [shape: f32[2,9,256], index: 1, kind: input, shape index: {}]   ;;  %s646_s2 = inlined_call_operand.vmem [shape: f32[2,2,9,256], index: 2, kind: output, shape index: {}]  }
   0x1   :  { %s579_s11 = smov 0   ;;  %s581_s12 = smov 0  }
   0x2   :  { %s583_s13 = smov 0  }
   0x3 LB: > { %s24_s14 = sadd.s32 1, %s550_s11  ;;  %s31_s15 = sadd.s32 1, %s554_s12  ;;  %s558_s13 = sphi %s583_s13, %s12_s13   ;;  %s554_s12 = sphi %s581_s12, %s650_s12   ;;  %s550_s11 = sphi %s579_s11, %s649_s11   ;;  %s546_s10 = sphi %s577_s10, %s648_s10   ;;  %s542_s9 = sphi %s575_s9, %s647_s9  }
   0x4   : > { %p25_p0 = scmp.ge.s32.totalorder %s24_s14, 2  ;;  %p456_p1 = scmp.ge.s32.totalorder %s558_s13, 1 }
   0x5   : > { %p165_p2 = scmp.lt.s32.totalorder %s558_s13, 5 }
   0x6   : > { %s652_s14 = smov (%p25_p0, %s24_s14), 0  ;;  %s654_s15 = smov (!%p25_p0, %s31_s15), %s554_s12 }
   0x7   : > { %p166_p3 = pnand %p456_p1, %p165_p2  ;;  %p33_p4 = scmp.ge.s32.totalorder %s654_s15, 2 }
   0x8   : > { %p213_p5 = scmp.lt.s32.totalorder (!%p166_p3), %s546_s10, 1  ;;  %p215_p6 = scmp.lt.s32.totalorder (!%p166_p3), %s542_s9, 1  ;;  %vm254_vm0 = vcmask (!%p166_p3), 1040384  }
   0x9   : > { %s656_s15 = smov (%p33_p4, %s654_s15), 0  ;;  %169 = sbr.rel (%p166_p3) target bundleno = 88 (0x58), region = 28 }
  0x10   : > { %s658_s10 = smov (!%p213_p5, %s546_s10), 1  ;;  %s660_s9 = smov (!%p215_p6, %s542_s9), 1 }
  0x11   : > { %s458_s16 = sshll.u32 %s658_s10, 3  ;;  %s457_s17 = sshll.u32 %s660_s9, 2 }
  0x12   : > { %s608_s18 = sadd.s32 %s458_s16, %s457_s17  ;;  %s467_s23 = sshll.u32 %s658_s10, 5 }
  0x13   : > { %s459_s19 = sshll.u32 %s608_s18, 3  ;;  %s234_s26 = scalar_lea.vmem %s645_s1, %s467_s23 }
  0x14   : > { %s224_s22 = scalar_lea.vmem %s644_s0, %s459_s19  ;;  %v283_v28 = vld [vmem:[%s234_s26] sm:$0xff]  ;;  %v285_v30 = vld [vmem:[%s234_s26 + $0x10] sm:$0x1]  ;;  %v284_v31 = vld [vmem:[%s234_s26 + $0x8] sm:$0xff]  ;;  %s248_s29 = scalar_lea.vmem %s646_s2, %s459_s19 }
  0x15   : > { %v250_v0 = vld [vmem:[%s224_s22] sm:$0xff]  ;;  %v251_v1 = vld [vmem:[%s224_s22 + $0x8] sm:$0xff]  ;;  %v252_v2 = vld [vmem:[%s224_s22 + $0x10] sm:$0x1] }
  0x16   : > { %v253_v3 = vld [vmem:[%s224_s22 + $0x18] sm:$0x1]  ;;  %v255_v4 = vsel %vm254_vm0, %v252_v2, -inf }
  0x17   : > { %v256_v5 = vmax.f32 %v250_v0, %v255_v4  ;;  %v263_v6 = vsel %vm254_vm0, %v253_v3, -inf  ;;  %v286_v33 = vld [vmem:[%s234_s26 + $0x18] sm:$0x1] }
  0x18   : > { %v264_v7 = vmax.f32 %v251_v1, %v263_v6 }
  0x19   : > { %v257_v8 = vrot.slane %v256_v5, 4 }
  0x1a   : > { %v265_v9 = vrot.slane %v264_v7, 4 }
  0x1b   : > { %v258_v10 = vmax.f32 %v256_v5, %v257_v8 }
  0x1c   : > { %v266_v11 = vmax.f32 %v264_v7, %v265_v9 }
  0x1d   : > { %v259_v12 = vrot.slane %v258_v10, 2 }
  0x1e   : > { %v267_v13 = vrot.slane %v266_v11, 2 }
  0x1f   : > { %v260_v14 = vmax.f32 %v258_v10, %v259_v12 }
  0x20   : > { %v268_v15 = vmax.f32 %v266_v11, %v267_v13 }
  0x21   : > { %v261_v16 = vrot.slane %v260_v14, 1 }
  0x22   : > { %v269_v17 = vrot.slane %v268_v15, 1 }
  0x23   : > { %v262_v18 = vmax.f32 %v260_v14, %v261_v16 }
  0x24   : > { %v270_v19 = vmax.f32 %v268_v15, %v269_v17 }
  0x25   : > { %v271_v20 = vsub.f32 %v250_v0, %v262_v18  ;;  %v273_v21 = vsub.f32 %v252_v2, %v262_v18 }
  0x26   : > { %v272_v22 = vsub.f32 %v251_v1, %v270_v19  ;;  %v274_v23 = vsub.f32 %v253_v3, %v270_v19 }
  0x27   : > { %v275_v24 = vmul.f32 1.442695, %v271_v20  ;;  %v279_v25 = vmul.f32 1.442695, %v273_v21 }
  0x28   : > { %v277_v26 = vmul.f32 1.442695, %v272_v22  ;;  %v281_v27 = vmul.f32 1.442695, %v274_v23 }
  0x29   : > { %508 = vpow2.f32 %v275_v24 }
  0x2a   : > { %510 = vpow2.f32 %v277_v26 }
  0x2b   : > { %512 = vpow2.f32 %v279_v25 }
  0x2c   : > { %514 = vpow2.f32 %v281_v27 }
  0x33   : > { %v509_v29 = vpop.eup %508 }
  0x34   : > { %v511_v32 = vpop.eup %510  ;;  %v287_v35 = vmul.f32 %v509_v29, %v283_v28 }
  0x35   : > { %v513_v34 = vpop.eup %512  ;;  %v288_v38 = vmul.f32 %v511_v32, %v284_v31 }
  0x36   : > { %v515_v36 = vpop.eup %514  ;;  %v289_v37 = vmul.f32 %v513_v34, %v285_v30 }
  0x37   : > { %v290_v39 = vmul.f32 %v515_v36, %v286_v33 }
  0x38   : > { %v291_v40 = vsel %vm254_vm0, %v289_v37, 0.0 }
  0x39   : > { %v292_v41 = vadd.f32 %v291_v40, %v287_v35  ;;  %v299_v42 = vsel %vm254_vm0, %v290_v39, 0.0 }
  0x3a   : > { %v300_v43 = vadd.f32 %v299_v42, %v288_v38 }
  0x3b   : > { %v293_v44 = vrot.slane %v292_v41, 4 }
  0x3c   : > { %v301_v45 = vrot.slane %v300_v43, 4 }
  0x3d   : > { %v294_v46 = vadd.f32 %v293_v44, %v292_v41 }
  0x3e   : > { %v302_v47 = vadd.f32 %v301_v45, %v300_v43 }
  0x3f   : > { %v295_v48 = vrot.slane %v294_v46, 2 }
  0x40   : > { %v303_v49 = vrot.slane %v302_v47, 2 }
  0x41   : > { %v296_v50 = vadd.f32 %v295_v48, %v294_v46 }
  0x42   : > { %v304_v51 = vadd.f32 %v303_v49, %v302_v47 }
  0x43   : > { %v297_v52 = vrot.slane %v296_v50, 1 }
  0x44   : > { %v305_v53 = vrot.slane %v304_v51, 1 }
  0x45   : > { %v298_v54 = vadd.f32 %v297_v52, %v296_v50 }
  0x46   : > { %v306_v55 = vadd.f32 %v305_v53, %v304_v51 }
  0x47   : > { %v307_v56 = vadd.f32 1e-15, %v298_v54 }
  0x48   : > { %v308_v57 = vadd.f32 1e-15, %v306_v55 }
  0x49   : > { %516 = vrcp.f32 %v307_v56 }
  0x4a   : > { %518 = vrcp.f32 %v308_v57 }
  0x53   : > { %v517_v58 = vpop.eup %516 }
  0x54   : > { %v519_v59 = vpop.eup %518  ;;  %v311_v60 = vmul.f32 %v517_v58, %v287_v35  ;;  %v313_v61 = vmul.f32 %v517_v58, %v289_v37 }
  0x55   : > { %v312_v62 = vmul.f32 %v519_v59, %v288_v38  ;;  %v314_v63 = vmul.f32 %v519_v59, %v290_v39 }
  0x56   : > { %315 = vst [vmem:[%s248_s29] sm:$0xff] %v311_v60  ;;  %317 = vst [vmem:[%s248_s29 + $0x10] sm:$0x1] %v313_v61 }
  0x57   : > { %316 = vst [vmem:[%s248_s29 + $0x8] sm:$0xff] %v312_v62  ;;  %318 = vst [vmem:[%s248_s29 + $0x18] sm:$0x1] %v314_v63 }
  0x58 PF: > { %s12_s13 = sadd.s32 1, %s558_s13   ;;  %s647_s9 = smov %s550_s11 }
  0x59   : > { %p9_p7 = scmp.ge.s32.totalorder %s12_s13, 6   ;;  %s648_s10 = smov %s554_s12 }
  0x5a   : > { %s649_s11 = smov %s652_s14  ;;  %s650_s12 = smov %s656_s15 }
  0x5b   :  { %11 = sbr.rel (!%p9_p7) target bundleno = 3 (0x3), region = 61 }

</bundles_post_ra>
